<compile_context>
chip_gen: v7x
topology: tpu7x:2x2x1
jax: 0.10.0
libtpu: 0.0.40
codegen_flags: <defaults>
</compile_context>

<pallas_src>
import jax
import jax.numpy as jnp
from jax.experimental import pallas as pl
from jax.experimental.pallas import tpu as pltpu

_LANE = 128
_SUBLANE = 8
_ROW_CHUNK = 256       # in-kernel row-processing chunk (bounds vreg pressure)
_MAX_TR = 1024
_MAX_TL = 16384


def _round_up(v, m):
    return ((v + m - 1) // m) * m


def _cdiv(a, b):
    return (a + b - 1) // b


# Generation-aware VMEM capacity (v5e/v6e: 128 MiB, v7x: 64 MiB per core).
try:
    _VMEM_CAP = int(pltpu.get_tpu_info().vmem_capacity_bytes)
except Exception:  # non-TPU backend / older API -> conservative default
    _VMEM_CAP = 128 * 1024 * 1024

# Streaming-tile byte budget. v7x (64 MiB VMEM but ~3.2 TB/s HBM) needs bigger
# tiles to amortize the ~0.35us per-grid-step overhead; ~4 MiB is plenty for
# v5e/v6e at their lower HBM bandwidth (already near roofline there).
_TILE_BUDGET = (6 << 20) if _VMEM_CAP <= (64 << 20) else (4 << 20)


def _select_tiles(R, HW, itemsize, budget):
    r_al = _round_up(max(R, 1), _SUBLANE)
    hw_al = _round_up(max(HW, 1), _LANE)

    # Lane-dense first: widest lane tile that fits the budget at 8 rows.
    tl = (budget // (_SUBLANE * itemsize)) // _LANE * _LANE
    tl = int(min(max(tl, _LANE), hw_al, _MAX_TL))

    # Rows fill out the remaining byte budget.
    tr = (budget // (tl * itemsize)) // _SUBLANE * _SUBLANE
    tr = int(min(max(tr, _SUBLANE), r_al, _MAX_TR))

    # v7x megacore: prefer >= 2 (ideally 4) blocks along the 'parallel' row
    # axis so both TensorCores get pass-1 work, but never shrink a tile below
    # ~1 MiB (per-grid-step overhead would dominate). No-op on 1-TC chips.
    if R > _SUBLANE and _cdiv(R, tr) < 4:
        for want in (4, 2):
            cand = _round_up(_cdiv(R, want), _SUBLANE)
            if cand < tr and cand * tl * itemsize >= (1 << 20):
                tr = cand
                break
    return tr, tl


# ---------------------------------------------------------------------------
# Pass 1: per-row sum of |x| (AdaptiveAvgPool2d(1) numerator)
# ---------------------------------------------------------------------------
def _make_abs_sum_kernel(tr, tl, rc, hw, nj):
    ngroups = tl // _LANE
    last_cols = hw - (nj - 1) * tl          # valid lanes in the last lane tile
    ragged = last_cols < tl

    def accum(x_ref, acc_ref, masked):
        # Pure-VPU hot loop: 128-lane chunks, |.| + add into the (tr, 128)
        # accumulator. No cross-lane (XLU) work, no narrow masked store.
        for rs in range(0, tr, rc):
            re = min(tr, rs + rc)
            for g in range(ngroups):
                lo = g * _LANE
                rem = (last_cols - lo) if masked else _LANE
                if rem <= 0:                # chunk entirely past HW: skip
                    continue
                chunk = jnp.abs(x_ref[rs:re, lo:lo + _LANE]).astype(jnp.float32)
                if rem < _LANE:             # ragged edge: zero OOB lanes
                    lane = jax.lax.broadcasted_iota(jnp.int32, chunk.shape, 1)
                    chunk = jnp.where(lane < rem, chunk, 0.0)
                acc_ref[rs:re, :] += chunk

    def kernel(x_ref, sum_ref, acc_ref):
        j = pl.program_id(1)

        @pl.when(j == 0)
        def _():
            acc_ref[...] = jnp.zeros_like(acc_ref)

        if not ragged:
            accum(x_ref, acc_ref, masked=False)
        elif nj == 1:
            accum(x_ref, acc_ref, masked=True)
        else:
            @pl.when(j < nj - 1)
            def _():
                accum(x_ref, acc_ref, masked=False)

            @pl.when(j == nj - 1)
            def _():
                accum(x_ref, acc_ref, masked=True)

        # Cross-lane 128 -> 1 reduce and the (tr, 1) store only once per row
        # block; out-of-bounds rows of the edge block are dropped on writeback.
        @pl.when(j == nj - 1)
        def _():
            sum_ref[...] = jnp.sum(acc_ref[...], axis=-1, keepdims=True)

    return kernel


# ---------------------------------------------------------------------------
# Pass 2: out = sign(x) * max(|x| - thr, 0), thr (f32) broadcast per row
# ---------------------------------------------------------------------------
def _make_apply_kernel(tr, tl, rc, out_dtype):
    ngroups = tl // _LANE
    use_signbit = jnp.dtype(out_dtype) == jnp.dtype(jnp.float32)

    def kernel(x_ref, thr_ref, o_ref):
        for rs in range(0, tr, rc):
            re = min(tr, rs + rc)
            thr = thr_ref[rs:re, :]                       # (rows, 1) float32
            for g in range(ngroups):
                lo = g * _LANE
                x = x_ref[rs:re, lo:lo + _LANE]
                # Threshold applied in f32 even for low-precision inputs.
                n_sub = jnp.maximum(jnp.abs(x).astype(jnp.float32) - thr, 0.0)
                if use_signbit:
                    # Sign-bit transplant: n_sub >= 0 and thr >= 0 (thr is
                    # mean|x| * sigmoid(...) >= 0), so OR-ing x's sign bit
                    # equals sign(x) * n_sub (x == 0 gives +/-0, identical).
                    sbit = pltpu.bitcast(x, jnp.uint32) & jnp.uint32(0x80000000)
                    out = pltpu.bitcast(
                        pltpu.bitcast(n_sub, jnp.uint32) | sbit, jnp.float32)
                else:
                    out = jnp.where(x < 0, -n_sub, n_sub).astype(out_dtype)
                o_ref[rs:re, lo:lo + _LANE] = out

    return kernel


# ---------------------------------------------------------------------------
# Wrapper
# ---------------------------------------------------------------------------
def _denoise_forward_impl(x, w1, b1, gamma, beta, w2, b2, *, tile_budget=None):
    """x: (N, C, H, W) -> (N, C, H, W). gap_size == 1 assumed."""
    N, C, H, W = x.shape
    R, HW = N * C, H * W
    itemsize = jnp.dtype(x.dtype).itemsize
    budget = _TILE_BUDGET if tile_budget is None else int(tile_budget)

    tr, tl = _select_tiles(R, HW, itemsize, budget)
    rc = min(tr, _ROW_CHUNK)
    ni, nj = _cdiv(R, tr), _cdiv(HW, tl)
    grid = (ni, nj)

    tile_bytes = tr * tl * itemsize
    # Pass-2 working set: 2 input + 2 output tile buffers (+ tiny thr/scratch);
    # cap at 3/4 of the physical VMEM of this generation.
    vmem_limit = int(min(_VMEM_CAP * 3 // 4,
                         max(16 << 20, 4 * tile_bytes + (8 << 20))))

    x2 = x.reshape(R, HW)        # free view: no pad, no copy

    # ---- pass 1: streamed per-(n, c) sum of |x| ------------------------------
    sums = pl.pallas_call(
        _make_abs_sum_kernel(tr, tl, rc, HW, nj),
        out_shape=jax.ShapeDtypeStruct((R, 1), jnp.float32),
        grid=grid,
        in_specs=[pl.BlockSpec((tr, tl), lambda i, j: (i, j))],
        out_specs=pl.BlockSpec((tr, 1), lambda i, j: (i, 0)),
        scratch_shapes=[pltpu.VMEM((tr, _LANE), jnp.float32)],
        compiler_params=pltpu.CompilerParams(
            dimension_semantics=("parallel", "arbitrary"),
            vmem_limit_bytes=vmem_limit),
    )(x2)

    # ---- tiny FC / BN (training-mode batch stats) / ReLU / FC / Sigmoid -----
    # Negligible compute: plain JAX keeps it from constraining the streaming
    # tiling.  Everything stays in float32.
    avg = (sums[:, 0] / float(HW)).reshape(N, C)
    h = avg @ w1.T + b1
    mu = jnp.mean(h, axis=0, keepdims=True)
    var = jnp.mean((h - mu) ** 2, axis=0, keepdims=True)
    h = (h - mu) * jax.lax.rsqrt(var + 1e-5) * gamma + beta
    h = jnp.maximum(h, 0.0)
    y = jax.nn.sigmoid(h @ w2.T + b2)
    thr = (avg * y).reshape(R, 1).astype(jnp.float32)   # thr >= 0, kept in f32

    # ---- pass 2: streamed thresholding + sign restore ------------------------
    out2 = pl.pallas_call(
        _make_apply_kernel(tr, tl, rc, x.dtype),
        out_shape=jax.ShapeDtypeStruct((R, HW), x.dtype),
        grid=grid,
        in_specs=[pl.BlockSpec((tr, tl), lambda i, j: (i, j)),
                  pl.BlockSpec((tr, 1), lambda i, j: (i, 0))],
        out_specs=pl.BlockSpec((tr, tl), lambda i, j: (i, j)),
        compiler_params=pltpu.CompilerParams(
            dimension_semantics=("parallel", "parallel"),
            vmem_limit_bytes=vmem_limit),
    )(x2, thr)

    return out2.reshape(N, C, H, W)


denoise_forward = jax.jit(_denoise_forward_impl, static_argnames=("tile_budget",))


# ---------------------------------------------------------------------------
# Plain-JAX reference mirroring the PyTorch forward (training-mode BN)
# ---------------------------------------------------------------------------
def _reference(x, w1, b1, gamma, beta, w2, b2):
    x_abs = jnp.abs(x)
    avg = jnp.mean(x_abs, axis=(2, 3))              # (N, C)
    h = avg @ w1.T + b1
    mu = jnp.mean(h, axis=0, keepdims=True)
    var = jnp.mean((h - mu) ** 2, axis=0, keepdims=True)
    h = (h - mu) / jnp.sqrt(var + 1e-5) * gamma + beta
    h = jnp.maximum(h, 0.0)
    y = jax.nn.sigmoid(h @ w2.T + b2)
    thr = (avg * y)[:, :, None, None]
    n_sub = jnp.maximum(x_abs - thr, 0.0)
    return jnp.sign(x) * n_sub


def _run_case(key, N, C, H, W, tile_budget=None):
    kx, k1, k2, k3, k4 = jax.random.split(key, 5)
    x = jax.random.normal(kx, (N, C, H, W), dtype=jnp.float32)

    # Deterministic synthetic parameters (PyTorch Linear: W is (out, in)).
    bound = 1.0 / float(C) ** 0.5
    w1 = jax.random.uniform(k1, (C, C), jnp.float32, -bound, bound)
    b1 = jax.random.uniform(k2, (C,), jnp.float32, -bound, bound)
    w2 = jax.random.uniform(k3, (C, C), jnp.float32, -bound, bound)
    b2 = jax.random.uniform(k4, (C,), jnp.float32, -bound, bound)
    gamma = jnp.ones((C,), jnp.float32)   # BatchNorm1d default affine init
    beta = jnp.zeros((C,), jnp.float32)

    out = jax.block_until_ready(
        denoise_forward(x, w1, b1, gamma, beta, w2, b2, tile_budget=tile_budget))
    ref = _reference(x, w1, b1, gamma, beta, w2, b2)
    assert out.shape == (N, C, H, W)
    assert jnp.allclose(out, ref, atol=1e-5, rtol=1e-5), (
        f"mismatch vs reference for shape {(N, C, H, W)}")


if __name__ == "__main__":
    key = jax.random.PRNGKey(0)
    k0, k1, k2 = jax.random.split(key, 3)
    # Aligned: R = 8 rows, HW = 256 lanes -> single tile, no masking path.
    _run_case(k0, 2, 4, 16, 16)
    # Unaligned small: exercises ragged row/lane edges without any HBM padding.
    _run_case(k1, 2, 3, 7, 7)
    # Forced-small tile budget: exercises multi-tile streaming (2x3 grid),
    # accumulation across lane tiles, and the masked ragged last lane tile.
    _run_case(k2, 3, 5, 20, 35, tile_budget=8 * 1024)
    print("KERNEL_OK")
</pallas_src>

<mosaic_0001>
module attributes {stable_mosaic.version = 11 : i64} {
  func.func @kernel(%arg0: i32, %arg1: i32, %arg2: memref<8x256xf32, #tpu.memory_space<vmem>>, %arg3: memref<8x1xf32, #tpu.memory_space<vmem>>, %arg4: memref<8x128xf32, #tpu.memory_space<vmem>>) attributes {dimension_semantics = [#tpu.dimension_semantics<parallel>, #tpu.dimension_semantics<arbitrary>], iteration_bounds = array<i64: 1, 1>, scalar_prefetch = 0 : i64, scratch_operands = 1 : i64, tpu.core_type = #tpu.core_type<tc>, window_params = [{transform_indices = @transform_0, window_bounds = array<i64: 8, 256>}, {transform_indices = @transform_1, window_bounds = array<i64: 8, 1>}]} {
    %c0_i32 = arith.constant 0 : i32
    %0 = arith.cmpi eq, %arg1, %c0_i32 : i32
    %1 = arith.extui %0 : i1 to i32
    %c0_i32_0 = arith.constant 0 : i32
    %2 = arith.cmpi ne, %1, %c0_i32_0 : i32
    scf.if %2 {
      %cst = arith.constant 0.000000e+00 : f32
      %16 = vector.broadcast %cst : f32 to vector<8x128xf32>
      %c0_13 = arith.constant 0 : index
      %c0_14 = arith.constant 0 : index
      %17 = vector.load %arg4[%c0_13, %c0_14] : memref<8x128xf32, #tpu.memory_space<vmem>>, vector<8x128xf32>
      tpu.vector_store %arg4[%c0_13, %c0_14], %16 {strides = array<i32>} : memref<8x128xf32, #tpu.memory_space<vmem>>, vector<8x128xf32>,
    } else {
    }
    %c0 = arith.constant 0 : index
    %c0_1 = arith.constant 0 : index
    %3 = vector.load %arg2[%c0, %c0_1] : memref<8x256xf32, #tpu.memory_space<vmem>>, vector<8x128xf32>
    %4 = math.absf %3 : vector<8x128xf32>
    %c0_2 = arith.constant 0 : index
    %c0_3 = arith.constant 0 : index
    %5 = vector.load %arg4[%c0_2, %c0_3] : memref<8x128xf32, #tpu.memory_space<vmem>>, vector<8x128xf32>
    %6 = arith.addf %5, %4 : vector<8x128xf32>
    %c0_4 = arith.constant 0 : index
    %c0_5 = arith.constant 0 : index
    %7 = vector.load %arg4[%c0_4, %c0_5] : memref<8x128xf32, #tpu.memory_space<vmem>>, vector<8x128xf32>
    tpu.vector_store %arg4[%c0_4, %c0_5], %6 {strides = array<i32>} : memref<8x128xf32, #tpu.memory_space<vmem>>, vector<8x128xf32>,
    %c0_6 = arith.constant 0 : index
    %c128 = arith.constant 128 : index
    %8 = vector.load %arg2[%c0_6, %c128] : memref<8x256xf32, #tpu.memory_space<vmem>>, vector<8x128xf32>
    %9 = math.absf %8 : vector<8x128xf32>
    %c0_7 = arith.constant 0 : index
    %c0_8 = arith.constant 0 : index
    %10 = vector.load %arg4[%c0_7, %c0_8] : memref<8x128xf32, #tpu.memory_space<vmem>>, vector<8x128xf32>
    %11 = arith.addf %10, %9 : vector<8x128xf32>
    %c0_9 = arith.constant 0 : index
    %c0_10 = arith.constant 0 : index
    %12 = vector.load %arg4[%c0_9, %c0_10] : memref<8x128xf32, #tpu.memory_space<vmem>>, vector<8x128xf32>
    tpu.vector_store %arg4[%c0_9, %c0_10], %11 {strides = array<i32>} : memref<8x128xf32, #tpu.memory_space<vmem>>, vector<8x128xf32>,
    %c0_i32_11 = arith.constant 0 : i32
    %13 = arith.cmpi eq, %arg1, %c0_i32_11 : i32
    %14 = arith.extui %13 : i1 to i32
    %c0_i32_12 = arith.constant 0 : i32
    %15 = arith.cmpi ne, %14, %c0_i32_12 : i32
    scf.if %15 {
      %c0_13 = arith.constant 0 : index
      %c0_14 = arith.constant 0 : index
      %16 = vector.load %arg4[%c0_13, %c0_14] : memref<8x128xf32, #tpu.memory_space<vmem>>, vector<8x128xf32>
      %cst = arith.constant dense<0.000000e+00> : vector<8xf32>
      %17 = vector.multi_reduction <add>, %16, %cst [1] : vector<8x128xf32> to vector<8xf32>
      %18 = vector.shape_cast %17 : vector<8xf32> to vector<8x1xf32>
      %c0_15 = arith.constant 0 : index
      %c0_16 = arith.constant 0 : index
      %19 = vector.load %arg3[%c0_15, %c0_16] : memref<8x1xf32, #tpu.memory_space<vmem>>, vector<8x1xf32>
      tpu.vector_store %arg3[%c0_15, %c0_16], %18 {strides = array<i32>} : memref<8x1xf32, #tpu.memory_space<vmem>>, vector<8x1xf32>,
    } else {
    }
    return
  }
  func.func @transform_0(%arg0: i32, %arg1: i32) -> (i32, i32) {
    %c0_i32 = arith.constant 0 : i32
    return %arg0, %arg1 : i32, i32
  }
  func.func @transform_1(%arg0: i32, %arg1: i32) -> (i32, i32) {
    %c0_i32 = arith.constant 0 : i32
    %c0_i32_0 = arith.constant 0 : i32
    return %arg0, %c0_i32 : i32, i32
  }
}

module attributes {stable_mosaic.version = 11 : i64} {
  func.func @kernel(%arg0: i32, %arg1: i32, %arg2: memref<8x256xf32, #tpu.memory_space<vmem>>, %arg3: memref<8x1xf32, #tpu.memory_space<vmem>>, %arg4: memref<8x256xf32, #tpu.memory_space<vmem>>) attributes {dimension_semantics = [#tpu.dimension_semantics<parallel>, #tpu.dimension_semantics<parallel>], iteration_bounds = array<i64: 1, 1>, scalar_prefetch = 0 : i64, scratch_operands = 0 : i64, tpu.core_type = #tpu.core_type<tc>, window_params = [{transform_indices = @transform_0, window_bounds = array<i64: 8, 256>}, {transform_indices = @transform_1, window_bounds = array<i64: 8, 1>}, {transform_indices = @transform_2, window_bounds = array<i64: 8, 256>}]} {
    %c0 = arith.constant 0 : index
    %c0_0 = arith.constant 0 : index
    %0 = vector.load %arg3[%c0, %c0_0] : memref<8x1xf32, #tpu.memory_space<vmem>>, vector<8x1xf32>
    %c0_1 = arith.constant 0 : index
    %c0_2 = arith.constant 0 : index
    %1 = vector.load %arg2[%c0_1, %c0_2] : memref<8x256xf32, #tpu.memory_space<vmem>>, vector<8x128xf32>
    %2 = math.absf %1 : vector<8x128xf32>
    %3 = vector.broadcast %0 : vector<8x1xf32> to vector<8x128xf32>
    %4 = arith.subf %2, %3 : vector<8x128xf32>
    %cst = arith.constant 0.000000e+00 : f32
    %5 = vector.broadcast %cst : f32 to vector<8x128xf32>
    %6 = arith.maximumf %4, %5 : vector<8x128xf32>
    %7 = tpu.bitcast %1 : vector<8x128xf32> -> vector<8x128xi32>
    %c-2147483648_i32 = arith.constant -2147483648 : i32
    %8 = vector.broadcast %c-2147483648_i32 : i32 to vector<8x128xi32>
    %9 = arith.andi %7, %8 : vector<8x128xi32>
    %10 = tpu.bitcast %6 : vector<8x128xf32> -> vector<8x128xi32>
    %11 = arith.ori %10, %9 : vector<8x128xi32>
    %12 = tpu.bitcast %11 : vector<8x128xi32> -> vector<8x128xf32>
    %c0_3 = arith.constant 0 : index
    %c0_4 = arith.constant 0 : index
    %13 = vector.load %arg4[%c0_3, %c0_4] : memref<8x256xf32, #tpu.memory_space<vmem>>, vector<8x128xf32>
    tpu.vector_store %arg4[%c0_3, %c0_4], %12 {strides = array<i32>} : memref<8x256xf32, #tpu.memory_space<vmem>>, vector<8x128xf32>,
    %c0_5 = arith.constant 0 : index
    %c128 = arith.constant 128 : index
    %14 = vector.load %arg2[%c0_5, %c128] : memref<8x256xf32, #tpu.memory_space<vmem>>, vector<8x128xf32>
    %15 = math.absf %14 : vector<8x128xf32>
    %16 = vector.broadcast %0 : vector<8x1xf32> to vector<8x128xf32>
    %17 = arith.subf %15, %16 : vector<8x128xf32>
    %cst_6 = arith.constant 0.000000e+00 : f32
    %18 = vector.broadcast %cst_6 : f32 to vector<8x128xf32>
    %19 = arith.maximumf %17, %18 : vector<8x128xf32>
    %20 = tpu.bitcast %14 : vector<8x128xf32> -> vector<8x128xi32>
    %c-2147483648_i32_7 = arith.constant -2147483648 : i32
    %21 = vector.broadcast %c-2147483648_i32_7 : i32 to vector<8x128xi32>
    %22 = arith.andi %20, %21 : vector<8x128xi32>
    %23 = tpu.bitcast %19 : vector<8x128xf32> -> vector<8x128xi32>
    %24 = arith.ori %23, %22 : vector<8x128xi32>
    %25 = tpu.bitcast %24 : vector<8x128xi32> -> vector<8x128xf32>
    %c0_8 = arith.constant 0 : index
    %c128_9 = arith.constant 128 : index
    %26 = vector.load %arg4[%c0_8, %c128_9] : memref<8x256xf32, #tpu.memory_space<vmem>>, vector<8x128xf32>
    tpu.vector_store %arg4[%c0_8, %c128_9], %25 {strides = array<i32>} : memref<8x256xf32, #tpu.memory_space<vmem>>, vector<8x128xf32>,
    return
  }
  func.func @transform_0(%arg0: i32, %arg1: i32) -> (i32, i32) {
    %c0_i32 = arith.constant 0 : i32
    return %arg0, %arg1 : i32, i32
  }
  func.func @transform_1(%arg0: i32, %arg1: i32) -> (i32, i32) {
    %c0_i32 = arith.constant 0 : i32
    %c0_i32_0 = arith.constant 0 : i32
    return %arg0, %c0_i32 : i32, i32
  }
  func.func @transform_2(%arg0: i32, %arg1: i32) -> (i32, i32) {
    %c0_i32 = arith.constant 0 : i32
    return %arg0, %arg1 : i32, i32
  }
}

</mosaic_0001>

<bundles_post_ra>
// kernel: _denoise_forward_impl.2
= control target key start
LH: loop header
LB: loop body
LE: loop exit
PB: predicated region body
PF: predicated region fallthrough
CT: control target
= control target key end

     0   :  { %vm29_vm0 = vcmask 7168   ;;  %s54_s0 = inlined_call_operand.vmem [shape: f32[8,256], index: 0, kind: input, shape index: {}]   ;;  %s55_s1 = inlined_call_operand.vmem [shape: f32[8,1], index: 1, kind: output, shape index: {}]  }
   0x1   :  { %v13_v0 = vld [vmem:[%s54_s0] sm:$0xff]  ;;  %v18_v1 = vld [vmem:[%s54_s0 + $0x8] sm:$0xff] }
   0x2   :  { %v14_v2 = vand.u32 2147483647, %v13_v0  ;;  %v19_v3 = vand.u32 2147483647, %v18_v1 }
   0x4   :  { %v21_v4 = vadd.f32 %v19_v3, %v14_v2 }
   0x6   :  { %27 = vadd.xlane.f32.xlu0 %v21_v4 }
  0x93   :  { %v28_v5 = vpop.xlane.xlu0 %27 }
  0x94   :  { %30 = vst.msk [vmem:[%s55_s1] sm:$0xff] %vm29_vm0, %v28_v5 }

// kernel: _denoise_forward_impl.3
= control target key start
LH: loop header
LB: loop body
LE: loop exit
PB: predicated region body
PF: predicated region fallthrough
CT: control target
= control target key end

     0   :  { %v43_v0 = vmov 0   ;;  %s74_s1 = inlined_call_operand.vmem [shape: f32[8,1], index: 1, kind: input, shape index: {}]   ;;  %s75_s0 = inlined_call_operand.vmem [shape: f32[8,256], index: 0, kind: input, shape index: {}]   ;;  %s76_s2 = inlined_call_operand.vmem [shape: f32[8,256], index: 2, kind: output, shape index: {}]  }
   0x1   :  { %42 = vset.pattern.permute.xlu0 %v43_v0  ;;  %v11_v1 = vld [vmem:[%s74_s1] sm:$0xff]  ;;  %v27_v3 = vld [vmem:[%s75_s0 + $0x8] sm:$0xff] }
   0x2   :  { %16 = vperm.xlu0 %42, %v11_v1   ;;  %v12_v2 = vld [vmem:[%s75_s0] sm:$0xff]  ;;  %v28_v5 = vand.u32 2147483647, %v27_v3  ;;  %v32_v10 = vand.u32 2147483648, %v27_v3 }
   0x3   :  { %v13_v4 = vand.u32 2147483647, %v12_v2  ;;  %v22_v8 = vand.u32 2147483648, %v12_v2 }
  0x81   :  { %v17_v6 = vpop.permute.xlu0 %16 }
  0x82   :  { %v19_v7 = vsub.f32 %v13_v4, %v17_v6  ;;  %v29_v9 = vsub.f32 %v28_v5, %v17_v6 }
  0x84   :  { %v20_v11 = vmax.f32 %v19_v7, 0.0  ;;  %v30_v12 = vmax.f32 %v29_v9, 0.0 }
  0x86   :  { %v24_v13 = vor.u32 %v22_v8, %v20_v11  ;;  %v34_v14 = vor.u32 %v32_v10, %v30_v12 }
  0x88   :  { %26 = vst [vmem:[%s76_s2] sm:$0xff] %v24_v13  ;;  %36 = vst [vmem:[%s76_s2 + $0x8] sm:$0xff] %v34_v14 }

</bundles_post_ra>
